<compile_context>
chip_gen: v6e
topology: v6e:2x2x1
jax: 0.10.0
libtpu: 0.0.40
codegen_flags: <defaults>
</compile_context>

<pallas_src>
import math

import jax
import jax.numpy as jnp
from jax.experimental import pallas as pl
from jax.experimental.pallas import tpu as pltpu


# ----------------------------- Pallas kernel --------------------------------
def ncf_kernel(slab_ref, w1p_ref, b1_ref, w2_ref, b2_ref,
               wf_gmf_ref, wf_mlp_ref, bf_ref, out_ref):
    """One (TB, 128) batch tile of the NCF forward pass."""
    slab = slab_ref[...]                                      # (TB, 128) f32
    gdim = wf_gmf_ref.shape[1]                                # 32

    # --- GMF branch: elementwise product, final-layer weights folded in -----
    gmf_prod = slab[:, :gdim] * slab[:, gdim:2 * gdim]        # (TB, 32)
    gmf_c = jnp.sum(gmf_prod * wf_gmf_ref[...], axis=-1, keepdims=True)

    # --- MLP branch: Linear -> ReLU -> (Dropout = identity), twice ----------
    # w1p is zero-padded to (128, 64): rows [0,64) are zero, rows [64,128) are
    # W1, so the whole slab feeds the MXU with no lane slicing.
    h = jnp.dot(slab, w1p_ref[...],
                preferred_element_type=jnp.float32) + b1_ref[...]   # (TB, 64)
    h = jnp.maximum(h, 0.0)
    h = jnp.dot(h, w2_ref[...],
                preferred_element_type=jnp.float32) + b2_ref[...]   # (TB, 32)
    h = jnp.maximum(h, 0.0)
    mlp_c = jnp.sum(h * wf_mlp_ref[...], axis=-1, keepdims=True)    # (TB, 1)

    # --- Combine (replaces concat + N=1 MXU matmul) --------------------------
    out_ref[...] = gmf_c + mlp_c + bf_ref[0, 0]


def ncf_pallas(slab, w1p, b1, w2, b2, wf_gmf, wf_mlp, bf, *, tb_max=4096):
    B, D = slab.shape
    # Batch tile: multiple of 8 (sublane), capped by tb_max; pad B up to it.
    TB = min(tb_max, ((B + 7) // 8) * 8)
    Bp = ((B + TB - 1) // TB) * TB
    if Bp != B:
        slab = jnp.pad(slab, ((0, Bp - B), (0, 0)))
    grid = (Bp // TB,)

    def resident(shape):
        # Constant block index -> DMA'd once, stays VMEM-resident across grid.
        return pl.BlockSpec(shape, lambda i: (0, 0))

    out = pl.pallas_call(
        ncf_kernel,
        out_shape=jax.ShapeDtypeStruct((Bp, 1), jnp.float32),
        grid=grid,
        in_specs=[
            pl.BlockSpec((TB, D), lambda i: (i, 0)),      # activation slab
            resident(w1p.shape),                          # (128, 64)
            resident(b1.shape),                           # (1, 64)
            resident(w2.shape),                           # (64, 32)
            resident(b2.shape),                           # (1, 32)
            resident(wf_gmf.shape),                       # (1, 32)
            resident(wf_mlp.shape),                       # (1, 32)
            pl.BlockSpec(memory_space=pltpu.MemorySpace.SMEM),   # bf (1,1)
        ],
        out_specs=pl.BlockSpec((TB, 1), lambda i: (i, 0)),
        compiler_params=pltpu.CompilerParams(
            dimension_semantics=("parallel",),
            vmem_limit_bytes=32 * 1024 * 1024,
        ),
    )(slab, w1p, b1, w2, b2, wf_gmf, wf_mlp, bf)
    return out[:B, 0]                                      # squeeze(-1)


# ----------------------------- Parameter init --------------------------------
def xavier_uniform(key, fan_in, fan_out, shape):
    bound = math.sqrt(6.0 / (fan_in + fan_out))
    return jax.random.uniform(key, shape, jnp.float32, -bound, bound)


def init_params(key, num_users, num_items,
                gmf_emb_dim=32, mlp_emb_dim=32, mlp_layers=(64, 32)):
    keys = jax.random.split(key, 8)
    params = {}
    params["gmf_user_emb"] = xavier_uniform(keys[0], num_users, gmf_emb_dim,
                                            (num_users, gmf_emb_dim))
    params["gmf_item_emb"] = xavier_uniform(keys[1], num_items, gmf_emb_dim,
                                            (num_items, gmf_emb_dim))
    params["mlp_user_emb"] = xavier_uniform(keys[2], num_users, mlp_emb_dim,
                                            (num_users, mlp_emb_dim))
    params["mlp_item_emb"] = xavier_uniform(keys[3], num_items, mlp_emb_dim,
                                            (num_items, mlp_emb_dim))
    # MLP linears stored as (in_dim, out_dim); biases as (1, out_dim).
    in_dim = mlp_emb_dim * 2
    for li, out_dim in enumerate(mlp_layers):
        params[f"w{li + 1}"] = xavier_uniform(keys[4 + li], in_dim, out_dim,
                                              (in_dim, out_dim))
        params[f"b{li + 1}"] = jnp.zeros((1, out_dim), jnp.float32)
        in_dim = out_dim
    fin_in = gmf_emb_dim + mlp_layers[-1]
    params["wf"] = xavier_uniform(keys[6], fin_in, 1, (fin_in, 1))
    params["bf"] = jnp.zeros((1, 1), jnp.float32)
    return params


def pack_kernel_weights(params):
    """Produce kernel-ready (padded / split) weight tensors."""
    gdim = params["gmf_user_emb"].shape[1]
    mdim = params["mlp_user_emb"].shape[1]
    slab_dim = 2 * gdim + 2 * mdim                       # 128
    w1 = params["w1"]                                    # (2*mdim, 64)
    pad_rows = slab_dim - w1.shape[0]                    # 64
    w1p = jnp.concatenate(
        [jnp.zeros((pad_rows, w1.shape[1]), w1.dtype), w1], axis=0)  # (128, 64)
    wf = params["wf"]                                    # (gdim + 32, 1)
    wf_gmf = wf[:gdim, 0][None, :]                       # (1, 32)
    wf_mlp = wf[gdim:, 0][None, :]                       # (1, 32)
    return (w1p, params["b1"], params["w2"], params["b2"],
            wf_gmf, wf_mlp, params["bf"])


# ----------------------------- Forward wrapper --------------------------------
def ncf_forward(params, user, item, *, tb_max=4096):
    # Embedding gathers (glue, XLA), packed into one lane-dense (B, 128) slab.
    # TODO(synk): fuse the gathers into the kernel via scalar-prefetched
    # user/item indices + DMA gather (rows are only 128 B each, so the gather
    # DMAs need batching to pay off); left to XLA's gather for now.
    gmf_u = params["gmf_user_emb"][user]                 # (B, 32)
    gmf_i = params["gmf_item_emb"][item]                 # (B, 32)
    mlp_u = params["mlp_user_emb"][user]                 # (B, 32)
    mlp_i = params["mlp_item_emb"][item]                 # (B, 32)
    slab = jnp.concatenate([gmf_u, gmf_i, mlp_u, mlp_i], axis=-1)   # (B, 128)
    return ncf_pallas(slab, *pack_kernel_weights(params), tb_max=tb_max)


# Pure-JAX reference for a sanity check.
def ncf_reference(params, user, item):
    gmf_out = params["gmf_user_emb"][user] * params["gmf_item_emb"][item]
    mlp_in = jnp.concatenate([params["mlp_user_emb"][user],
                              params["mlp_item_emb"][item]], axis=-1)
    h = jnp.maximum(mlp_in @ params["w1"] + params["b1"], 0.0)
    h = jnp.maximum(h @ params["w2"] + params["b2"], 0.0)
    combined = jnp.concatenate([gmf_out, h], axis=-1)
    return (combined @ params["wf"] + params["bf"])[:, 0]


if __name__ == "__main__":
    key = jax.random.PRNGKey(0)
    num_users, num_items, batch = 16, 16, 8

    pkey, ukey, ikey = jax.random.split(key, 3)
    params = init_params(pkey, num_users, num_items)
    user = jax.random.randint(ukey, (batch,), 0, num_users, dtype=jnp.int32)
    item = jax.random.randint(ikey, (batch,), 0, num_items, dtype=jnp.int32)

    out = jax.block_until_ready(ncf_forward(params, user, item))
    ref = ncf_reference(params, user, item)
    assert out.shape == (batch,), out.shape
    assert jnp.allclose(out, ref, atol=1e-5, rtol=1e-5), (out, ref)

    # Exercise the batch grid + padding path (multi-tile, B not a tile mult.).
    b2 = 37
    u2 = jax.random.randint(jax.random.PRNGKey(1), (b2,), 0, num_users,
                            dtype=jnp.int32)
    i2 = jax.random.randint(jax.random.PRNGKey(2), (b2,), 0, num_items,
                            dtype=jnp.int32)
    out2 = jax.block_until_ready(ncf_forward(params, u2, i2, tb_max=16))
    ref2 = ncf_reference(params, u2, i2)
    assert out2.shape == (b2,), out2.shape
    assert jnp.allclose(out2, ref2, atol=1e-5, rtol=1e-5), (out2, ref2)

    print("KERNEL_OK")
</pallas_src>

<mosaic_0001>
module attributes {stable_mosaic.version = 11 : i64} {
  func.func @ncf_kernel(%arg0: i32, %arg1: memref<8x128xf32, #tpu.memory_space<vmem>>, %arg2: memref<128x64xf32, #tpu.memory_space<vmem>>, %arg3: memref<1x64xf32, #tpu.memory_space<vmem>>, %arg4: memref<64x32xf32, #tpu.memory_space<vmem>>, %arg5: memref<1x32xf32, #tpu.memory_space<vmem>>, %arg6: memref<1x32xf32, #tpu.memory_space<vmem>>, %arg7: memref<1x32xf32, #tpu.memory_space<vmem>>, %arg8: memref<1x1xf32, #tpu.memory_space<smem>>, %arg9: memref<8x1xf32, #tpu.memory_space<vmem>>) attributes {dimension_semantics = [#tpu.dimension_semantics<parallel>], iteration_bounds = array<i64: 1>, scalar_prefetch = 0 : i64, scratch_operands = 0 : i64, tpu.core_type = #tpu.core_type<tc>, window_params = [{transform_indices = @transform_0, window_bounds = array<i64: 8, 128>}, {pipeline_mode = #tpu.pipeline_mode<synchronous>, transform_indices = @transform_1, window_bounds = array<i64: 128, 64>}, {pipeline_mode = #tpu.pipeline_mode<synchronous>, transform_indices = @transform_2, window_bounds = array<i64: 1, 64>}, {pipeline_mode = #tpu.pipeline_mode<synchronous>, transform_indices = @transform_3, window_bounds = array<i64: 64, 32>}, {pipeline_mode = #tpu.pipeline_mode<synchronous>, transform_indices = @transform_4, window_bounds = array<i64: 1, 32>}, {pipeline_mode = #tpu.pipeline_mode<synchronous>, transform_indices = @transform_5, window_bounds = array<i64: 1, 32>}, {pipeline_mode = #tpu.pipeline_mode<synchronous>, transform_indices = @transform_6, window_bounds = array<i64: 1, 32>}, {transform_indices = @transform_7, window_bounds = array<i64: 1, 1>}, {transform_indices = @transform_8, window_bounds = array<i64: 8, 1>}]} {
    %c0 = arith.constant 0 : index
    %c0_0 = arith.constant 0 : index
    %0 = vector.load %arg1[%c0, %c0_0] : memref<8x128xf32, #tpu.memory_space<vmem>>, vector<8x128xf32>
    %1 = vector.extract_strided_slice %0 {offsets = [0, 0], sizes = [8, 32], strides = [1, 1]} : vector<8x128xf32> to vector<8x32xf32>
    %2 = vector.extract_strided_slice %0 {offsets = [0, 32], sizes = [8, 32], strides = [1, 1]} : vector<8x128xf32> to vector<8x32xf32>
    %3 = arith.mulf %1, %2 : vector<8x32xf32>
    %c0_1 = arith.constant 0 : index
    %c0_2 = arith.constant 0 : index
    %4 = vector.load %arg6[%c0_1, %c0_2] : memref<1x32xf32, #tpu.memory_space<vmem>>, vector<1x32xf32>
    %5 = vector.broadcast %4 : vector<1x32xf32> to vector<8x32xf32>
    %6 = arith.mulf %3, %5 : vector<8x32xf32>
    %cst = arith.constant dense<0.000000e+00> : vector<8xf32>
    %7 = vector.multi_reduction <add>, %6, %cst [1] : vector<8x32xf32> to vector<8xf32>
    %8 = vector.shape_cast %7 : vector<8xf32> to vector<8x1xf32>
    %c0_3 = arith.constant 0 : index
    %c0_4 = arith.constant 0 : index
    %9 = vector.load %arg2[%c0_3, %c0_4] : memref<128x64xf32, #tpu.memory_space<vmem>>, vector<128x64xf32>
    %cst_5 = arith.constant dense<0.000000e+00> : vector<8x64xf32>
    %10 = tpu.matmul %0, %9, %cst_5 {dimension_numbers = #tpu.dot_dimension_numbers<[1], [0], [0], [1], [0, 0, 1, 1], [], []>} : vector<8x128xf32>, vector<128x64xf32>, vector<8x64xf32> -> vector<8x64xf32>
    %c0_6 = arith.constant 0 : index
    %c0_7 = arith.constant 0 : index
    %11 = vector.load %arg3[%c0_6, %c0_7] : memref<1x64xf32, #tpu.memory_space<vmem>>, vector<1x64xf32>
    %12 = vector.broadcast %11 : vector<1x64xf32> to vector<8x64xf32>
    %13 = arith.addf %10, %12 : vector<8x64xf32>
    %cst_8 = arith.constant 0.000000e+00 : f32
    %14 = vector.broadcast %cst_8 : f32 to vector<8x64xf32>
    %15 = arith.maximumf %13, %14 : vector<8x64xf32>
    %c0_9 = arith.constant 0 : index
    %c0_10 = arith.constant 0 : index
    %16 = vector.load %arg4[%c0_9, %c0_10] : memref<64x32xf32, #tpu.memory_space<vmem>>, vector<64x32xf32>
    %cst_11 = arith.constant dense<0.000000e+00> : vector<8x32xf32>
    %17 = tpu.matmul %15, %16, %cst_11 {dimension_numbers = #tpu.dot_dimension_numbers<[1], [0], [0], [1], [0, 0, 1, 1], [], []>} : vector<8x64xf32>, vector<64x32xf32>, vector<8x32xf32> -> vector<8x32xf32>
    %c0_12 = arith.constant 0 : index
    %c0_13 = arith.constant 0 : index
    %18 = vector.load %arg5[%c0_12, %c0_13] : memref<1x32xf32, #tpu.memory_space<vmem>>, vector<1x32xf32>
    %19 = vector.broadcast %18 : vector<1x32xf32> to vector<8x32xf32>
    %20 = arith.addf %17, %19 : vector<8x32xf32>
    %cst_14 = arith.constant 0.000000e+00 : f32
    %21 = vector.broadcast %cst_14 : f32 to vector<8x32xf32>
    %22 = arith.maximumf %20, %21 : vector<8x32xf32>
    %c0_15 = arith.constant 0 : index
    %c0_16 = arith.constant 0 : index
    %23 = vector.load %arg7[%c0_15, %c0_16] : memref<1x32xf32, #tpu.memory_space<vmem>>, vector<1x32xf32>
    %24 = vector.broadcast %23 : vector<1x32xf32> to vector<8x32xf32>
    %25 = arith.mulf %22, %24 : vector<8x32xf32>
    %cst_17 = arith.constant dense<0.000000e+00> : vector<8xf32>
    %26 = vector.multi_reduction <add>, %25, %cst_17 [1] : vector<8x32xf32> to vector<8xf32>
    %27 = vector.shape_cast %26 : vector<8xf32> to vector<8x1xf32>
    %28 = arith.addf %8, %27 : vector<8x1xf32>
    %c0_18 = arith.constant 0 : index
    %c0_19 = arith.constant 0 : index
    %29 = memref.load %arg8[%c0_18, %c0_19] : memref<1x1xf32, #tpu.memory_space<smem>>
    %30 = vector.broadcast %29 : f32 to vector<8x1xf32>
    %31 = arith.addf %28, %30 : vector<8x1xf32>
    %c0_20 = arith.constant 0 : index
    %c0_21 = arith.constant 0 : index
    %32 = vector.load %arg9[%c0_20, %c0_21] : memref<8x1xf32, #tpu.memory_space<vmem>>, vector<8x1xf32>
    tpu.vector_store %arg9[%c0_20, %c0_21], %31 {strides = array<i32>} : memref<8x1xf32, #tpu.memory_space<vmem>>, vector<8x1xf32>,
    return
  }
  func.func @transform_0(%arg0: i32) -> (i32, i32) {
    %c0_i32 = arith.constant 0 : i32
    %c0_i32_0 = arith.constant 0 : i32
    return %arg0, %c0_i32 : i32, i32
  }
  func.func @transform_1(%arg0: i32) -> (i32, i32) {
    %c0_i32 = arith.constant 0 : i32
    %c0_i32_0 = arith.constant 0 : i32
    %c0_i32_1 = arith.constant 0 : i32
    return %c0_i32, %c0_i32_0 : i32, i32
  }
  func.func @transform_2(%arg0: i32) -> (i32, i32) {
    %c0_i32 = arith.constant 0 : i32
    %c0_i32_0 = arith.constant 0 : i32
    %c0_i32_1 = arith.constant 0 : i32
    return %c0_i32, %c0_i32_0 : i32, i32
  }
  func.func @transform_3(%arg0: i32) -> (i32, i32) {
    %c0_i32 = arith.constant 0 : i32
    %c0_i32_0 = arith.constant 0 : i32
    %c0_i32_1 = arith.constant 0 : i32
    return %c0_i32, %c0_i32_0 : i32, i32
  }
  func.func @transform_4(%arg0: i32) -> (i32, i32) {
    %c0_i32 = arith.constant 0 : i32
    %c0_i32_0 = arith.constant 0 : i32
    %c0_i32_1 = arith.constant 0 : i32
    return %c0_i32, %c0_i32_0 : i32, i32
  }
  func.func @transform_5(%arg0: i32) -> (i32, i32) {
    %c0_i32 = arith.constant 0 : i32
    %c0_i32_0 = arith.constant 0 : i32
    %c0_i32_1 = arith.constant 0 : i32
    return %c0_i32, %c0_i32_0 : i32, i32
  }
  func.func @transform_6(%arg0: i32) -> (i32, i32) {
    %c0_i32 = arith.constant 0 : i32
    %c0_i32_0 = arith.constant 0 : i32
    %c0_i32_1 = arith.constant 0 : i32
    return %c0_i32, %c0_i32_0 : i32, i32
  }
  func.func @transform_7(%arg0: i32) -> (i32, i32) {
    %c0_i32 = arith.constant 0 : i32
    %c0_i32_0 = arith.constant 0 : i32
    %c0_i32_1 = arith.constant 0 : i32
    return %c0_i32, %c0_i32_0 : i32, i32
  }
  func.func @transform_8(%arg0: i32) -> (i32, i32) {
    %c0_i32 = arith.constant 0 : i32
    %c0_i32_0 = arith.constant 0 : i32
    return %arg0, %c0_i32 : i32, i32
  }
}

</mosaic_0001>

<bundles_post_ra>
// kernel: tpu_custom_call.1
= control target key start
LH: loop header
LB: loop body
LE: loop exit
PB: predicated region body
PF: predicated region fallthrough
CT: control target
= control target key end

     0   :  { %v341_v0 = vmov 0.0   ;;  %vm342_vm0 = vmmov 0   ;;  %s343_s9 = smov 96   ;;  %vm157_vm1 = vcmask 523264   ;;  %vm44_vm2 = vcmask 261120   ;;  %s508_s1 = inlined_call_operand.vmem [shape: f32[128,64], index: 1, kind: input, shape index: {}]   ;;  %s509_s3 = inlined_call_operand.vmem [shape: f32[64,32], index: 3, kind: input, shape index: {}]   ;;  %s510_s0 = inlined_call_operand.vmem [shape: f32[8,128], index: 0, kind: input, shape index: {}]   ;;  %s511_s2 = inlined_call_operand.vmem [shape: f32[1,64], index: 2, kind: input, shape index: {}]   ;;  %s512_s5 = inlined_call_operand.vmem [shape: f32[1,32], index: 5, kind: input, shape index: {}]   ;;  %s513_s4 = inlined_call_operand.vmem [shape: f32[1,32], index: 4, kind: input, shape index: {}]   ;;  %s514_s6 = inlined_call_operand.vmem [shape: f32[1,32], index: 6, kind: input, shape index: {}]   ;;  %s515_s7 = inlined_call_operand.<no memory space> [shape: f32[1,1], index: 7, kind: input, shape index: {}]   ;;  %s516_s8 = inlined_call_operand.vmem [shape: f32[8,1], index: 8, kind: output, shape index: {}]  }
   0x1   :  { %284 = vmatprep.subr.mxu0 %v341_v0  ;;  %v63_v1 = vld [vmem:[%s508_s1 + $0x78] sm:$0xff]  ;;  %v62_v2 = vld [vmem:[%s508_s1 + $0x70] sm:$0xff]  ;;  %316 = vmatprep.mubr.msk.f32.mxu0 %vm342_vm0, %v341_v0  ;;  %v61_v3 = vld [vmem:[%s508_s1 + $0x68] sm:$0xff]  ;;  %v245_v45 = vstv %s515_s7  ;;  %vm247_vm3 = vcmask 7168  }
   0x2   :  { %285 = vmatpush3.msra.mxu0 %v63_v1  ;;  %319 = vmatprep.subr.mxu1 %v341_v0  ;;  %v60_v4 = vld [vmem:[%s508_s1 + $0x60] sm:$0xff]  ;;  %v149_v5 = vld [vmem:[%s509_s3 + $0x38] sm:$0xff]  ;;  %v148_v7 = vld [vmem:[%s509_s3 + $0x30] sm:$0xff] }
   0x3   :  { %286 = vmatprep.subr.mxu0 %v341_v0  ;;  %335 = vmatprep.mubr.msk.f32.mxu1 %vm342_vm0, %v341_v0  ;;  %v59_v6 = vld [vmem:[%s508_s1 + $0x58] sm:$0xff]  ;;  %v147_v8 = vld [vmem:[%s509_s3 + $0x28] sm:$0xff]  ;;  %v58_v9 = vld [vmem:[%s508_s1 + $0x50] sm:$0xff] }
   0x4   :  { %287 = vmatpush3.msra.mxu0 %v62_v2  ;;  %320 = vmatpush3.msra.mxu1 %v149_v5  ;;  %v146_v10 = vld [vmem:[%s509_s3 + $0x20] sm:$0xff]  ;;  %v57_v11 = vld [vmem:[%s508_s1 + $0x48] sm:$0xff]  ;;  %v145_v12 = vld [vmem:[%s509_s3 + $0x18] sm:$0xff] }
   0x5   :  { %288 = vmatprep.subr.mxu0 %v341_v0  ;;  %321 = vmatprep.subr.mxu1 %v341_v0  ;;  %v56_v13 = vld [vmem:[%s508_s1 + $0x40] sm:$0xff]  ;;  %v55_v14 = vld [vmem:[%s508_s1 + $0x38] sm:$0xff]  ;;  %v54_v15 = vld [vmem:[%s508_s1 + $0x30] sm:$0xff] }
   0x6   :  { %289 = vmatpush3.msra.mxu0 %v61_v3  ;;  %322 = vmatpush3.msra.mxu1 %v148_v7  ;;  %v53_v16 = vld [vmem:[%s508_s1 + $0x28] sm:$0xff]  ;;  %v52_v17 = vld [vmem:[%s508_s1 + $0x20] sm:$0xff]  ;;  %v51_v18 = vld [vmem:[%s508_s1 + $0x18] sm:$0xff] }
   0x7   :  { %290 = vmatprep.subr.mxu0 %v341_v0  ;;  %323 = vmatprep.subr.mxu1 %v341_v0  ;;  %v50_v19 = vld [vmem:[%s508_s1 + $0x10] sm:$0xff]  ;;  %v49_v20 = vld [vmem:[%s508_s1 + $0x8] sm:$0xff]  ;;  %v48_v21 = vld [vmem:[%s508_s1] sm:$0xff] }
   0x8   :  { %291 = vmatpush3.msra.mxu0 %v60_v4  ;;  %324 = vmatpush3.msra.mxu1 %v147_v8  ;;  %v30_v22 = vld [vmem:[%s510_s0] sm:$0xff]  ;;  %v144_v23 = vld [vmem:[%s509_s3 + $0x10] sm:$0xff]  ;;  %v143_v24 = vld [vmem:[%s509_s3 + $0x8] sm:$0xff] }
   0x9   :  { %292 = vmatprep.subr.mxu0 %v341_v0  ;;  %325 = vmatprep.subr.mxu1 %v341_v0  ;;  %v142_v25 = vld [vmem:[%s509_s3] sm:$0xff] }
   0xa   :  { %293 = vmatpush3.msra.mxu0 %v59_v6  ;;  %326 = vmatpush3.msra.mxu1 %v146_v10  ;;  %v254_v26 = vld [vmem:[%s511_s2] ss:$0 sm:$0xff] }
   0xb   :  { %294 = vmatprep.subr.mxu0 %v341_v0  ;;  %327 = vmatprep.subr.mxu1 %v341_v0  ;;  %v253_v33 = vld [vmem:[%s512_s5] ss:$0 sm:$0xff] }
   0xc   :  { %295 = vmatpush3.msra.mxu0 %v58_v9  ;;  %328 = vmatpush3.msra.mxu1 %v145_v12  ;;  %v255_v36 = vld [vmem:[%s513_s4] ss:$0 sm:$0xff] }
   0xd   :  { %296 = vmatprep.subr.mxu0 %v341_v0  ;;  %329 = vmatprep.subr.mxu1 %v341_v0  ;;  %v257_v40 = vld [vmem:[%s514_s6] ss:$0 sm:$0xff] }
   0xe   :  { %297 = vmatpush3.msra.mxu0 %v57_v11  ;;  %330 = vmatpush3.msra.mxu1 %v144_v23 }
   0xf   :  { %298 = vmatprep.subr.mxu0 %v341_v0  ;;  %331 = vmatprep.subr.mxu1 %v341_v0 }
  0x10   :  { %299 = vmatpush3.msra.mxu0 %v56_v13  ;;  %332 = vmatpush3.msra.mxu1 %v143_v24 }
  0x11   :  { %300 = vmatprep.subr.mxu0 %v341_v0  ;;  %333 = vmatprep.subr.mxu1 %v341_v0 }
  0x12   :  { %301 = vmatpush3.msra.mxu0 %v55_v14  ;;  %334 = vmatpush3.msra.mxu1 %v142_v25 }
  0x13   :  { %302 = vmatprep.subr.mxu0 %v341_v0  ;;  %32 = vrot.lane.b32.xlu0 %v30_v22, %s343_s9 }
  0x14   :  { %303 = vmatpush3.msra.mxu0 %v54_v15 }
  0x15   :  { %304 = vmatprep.subr.mxu0 %v341_v0 }
  0x16   :  { %305 = vmatpush3.msra.mxu0 %v53_v16 }
  0x17   :  { %306 = vmatprep.subr.mxu0 %v341_v0 }
  0x18   :  { %307 = vmatpush3.msra.mxu0 %v52_v17 }
  0x19   :  { %308 = vmatprep.subr.mxu0 %v341_v0 }
  0x1a   :  { %309 = vmatpush3.msra.mxu0 %v51_v18 }
  0x1b   :  { %310 = vmatprep.subr.mxu0 %v341_v0 }
  0x1c   :  { %311 = vmatpush3.msra.mxu0 %v50_v19 }
  0x1d   :  { %312 = vmatprep.subr.mxu0 %v341_v0 }
  0x1e   :  { %313 = vmatpush3.msra.mxu0 %v49_v20 }
  0x1f   :  { %314 = vmatprep.subr.mxu0 %v341_v0 }
  0x20   :  { %315 = vmatpush3.msra.mxu0 %v48_v21 }
  0x21   :  { %317 = vmatmul.mubr.f32.vlgmr.msra.gmra.mxu0 %v30_v22 }
  0x85   :  { %v33_v31 = vpop.permute.xlu0 %32 }
  0x86   :  { %v35_v32 = vmul.f32 %v33_v31, %v30_v22 }
  0x88   :  { %v43_v34 = vmul.f32 %v253_v33, %v35_v32 }
  0x8a   :  { %v45_v35 = vsel %vm44_vm2, %v43_v34, 0.0 }
  0x8b   :  { %46 = vadd.xlane.f32.xlu0 %v45_v35 }
  0xe1   :  { %v137_v27 = vpop.f32.mrf.mxu0 }
  0xe2   :  { %v138_v28 = vadd.f32 %v254_v26, %v137_v27 }
  0xe3   :  { %v318_v29 = vpop.f32.mrf.mxu0 }
  0xe4   :  { %v141_v30 = vmax.f32 %v138_v28, 0.0 }
  0xe6   :  { %336 = vmatmul.mubr.msk.f32.vlgmr.msra.gmra.mxu1 %vm157_vm1, %v141_v30 }
 0x114   :  { %v47_v44 = vpop.xlane.xlu0 %46 }
 0x1a6   :  { %v227_v37 = vpop.f32.mrf.mxu1 }
 0x1a7   :  { %v228_v38 = vadd.f32 %v255_v36, %v227_v37 }
 0x1a8   :  { %v337_v39 = vpop.f32.mrf.mxu1 }
 0x1a9   :  { %v231_v41 = vmax.f32 %v228_v38, 0.0 }
 0x1ab   :  { %v239_v42 = vmul.f32 %v257_v40, %v231_v41 }
 0x1ad   :  { %v240_v43 = vsel %vm44_vm2, %v239_v42, 0.0 }
 0x1ae   :  { %241 = vadd.xlane.f32.xlu1 %v240_v43 }
 0x237   :  { %v242_v46 = vpop.xlane.xlu1 %241 }
 0x238   :  { %v243_v47 = vadd.f32 %v242_v46, %v47_v44 }
 0x23a   :  { %v246_v48 = vadd.f32 %v245_v45, %v243_v47 }
 0x23c   :  { %248 = vst.msk [vmem:[%s516_s8] sm:$0xff] %vm247_vm3, %v246_v48 }

</bundles_post_ra>
